<compile_context>
chip_gen: v7x
topology: tpu7x:2x2x1
jax: 0.10.0
libtpu: 0.0.40
codegen_flags: <defaults>
</compile_context>

<pallas_src>
import math

import jax
import jax.numpy as jnp
from jax.experimental import pallas as pl
from jax.experimental.pallas import tpu as pltpu


def _round_up(x, m):
    return (x + m - 1) // m * m


def _mlp_kernel(es_ref, ed_ref, ctx_ref,
                w1_ref, b1_ref, w2_ref, b2_ref,
                w3_ref, b3_ref, w4_ref, b4_ref,
                out_ref):
    """Fused forward for one row tile: feature build + 4 Linears + ReLUs.

    Elementwise math / bias adds / ReLUs stay in f32 on the VPU (v5e has no
    bf16 VPU); only MXU operands are cast to the weight dtype (bf16 default)
    and every dot accumulates in f32.
    """
    f32 = jnp.float32
    mxu = w1_ref.dtype

    es = es_ref[...].astype(f32)
    ed = ed_ref[...].astype(f32)
    ctx = ctx_ref[...].astype(f32)

    eed = es * ed  # CSE: reused for the triple product.
    # torch.cat([es, ed, ctx, es*ed, es*ctx, ed*ctx, es*ed*ctx], dim=-1):
    # single lane-axis concat -> one K = 7*kg_emb_dim MXU dot for layer 1.
    m = jnp.concatenate(
        [es, ed, ctx, eed, es * ctx, ed * ctx, eed * ctx], axis=-1)

    h = jnp.dot(m.astype(mxu), w1_ref[...], preferred_element_type=f32)
    h = jnp.maximum(h + b1_ref[...], 0.0)

    h = jnp.dot(h.astype(mxu), w2_ref[...], preferred_element_type=f32)
    h = jnp.maximum(h + b2_ref[...], 0.0)

    h = jnp.dot(h.astype(mxu), w3_ref[...], preferred_element_type=f32)
    h = jnp.maximum(h + b3_ref[...], 0.0)

    h = jnp.dot(h.astype(mxu), w4_ref[...], preferred_element_type=f32)
    out_ref[...] = (h + b4_ref[...]).astype(out_ref.dtype)


def kg_context_infer_forward(es_rep, ed_rep, context_rep, params,
                             *, tile_rows=2048, mxu_dtype=jnp.bfloat16,
                             out_dtype=jnp.float32,
                             vmem_budget_bytes=20 * 1024 * 1024):
    """Pallas wrapper. es_rep/ed_rep/context_rep: [..., kg_emb_dim].

    Inputs are consumed in their native dtype (pass bf16 for half the input
    DMA traffic); weights go to `mxu_dtype`, biases stay f32.
    """
    (w1, b1), (w2, b2), (w3, b3), (w4, b4) = params
    kg_emb_dim = es_rep.shape[-1]
    lead_shape = es_rep.shape[:-1]
    n_rows = int(math.prod(lead_shape)) if lead_shape else 1
    relation_num = w4.shape[1]
    d1, d2, d3 = w1.shape[1], w2.shape[1], w3.shape[1]

    # Free metadata reshapes only — no dtype cast / pad passes over the inputs.
    es2 = es_rep.reshape(n_rows, kg_emb_dim)
    ed2 = ed_rep.reshape(n_rows, kg_emb_dim)
    ctx2 = context_rep.reshape(n_rows, kg_emb_dim)

    w1c = w1.astype(mxu_dtype)
    w2c = w2.astype(mxu_dtype)
    w3c = w3.astype(mxu_dtype)
    w4c = w4.astype(mxu_dtype)
    b1c = b1.reshape(1, d1).astype(jnp.float32)
    b2c = b2.reshape(1, d2).astype(jnp.float32)
    b3c = b3.reshape(1, d3).astype(jnp.float32)
    b4c = b4.reshape(1, relation_num).astype(jnp.float32)

    weights = (w1c, b1c, w2c, b2c, w3c, b3c, w4c, b4c)
    weight_bytes = sum(int(x.size) * x.dtype.itemsize for x in weights)
    in_isize = es2.dtype.itemsize
    out_isize = jnp.dtype(out_dtype).itemsize

    def vmem_bytes(tm_):
        # Double-buffered row inputs/outputs + in-kernel f32/bf16 temporaries
        # (concat feature + per-layer activations) + double-buffered weights.
        act = (3 * tm_ * kg_emb_dim * in_isize * 2
               + tm_ * relation_num * out_isize * 2
               + tm_ * 7 * kg_emb_dim * 6
               + tm_ * (d1 + d2 + d3) * 6)
        return act + 2 * weight_bytes

    # Big row tiles amortize the ~0.35 us/step pipeline overhead; keep >=2
    # grid steps when possible so v7x can shard the parallel axis over both
    # TensorCores; shrink if the VMEM estimate exceeds the budget.
    tm = min(int(tile_rows), max(16, _round_up(pl.cdiv(n_rows, 2), 16)))
    while tm > 16 and vmem_bytes(tm) > vmem_budget_bytes:
        tm = max(16, _round_up(tm // 2, 16))
    if tm >= n_rows:
        tm = n_rows  # single block; block dims == full array dims is legal

    grid = (pl.cdiv(n_rows, tm),)  # no row padding: tail block is masked

    row_spec = pl.BlockSpec((tm, kg_emb_dim), lambda i: (i, 0))

    def resident(x):
        # Same block every grid step -> stays VMEM-resident across the grid.
        return pl.BlockSpec(x.shape, lambda i: (0, 0))

    flops = 2 * n_rows * (7 * kg_emb_dim * d1 + d1 * d2 + d2 * d3
                          + d3 * relation_num)
    bytes_accessed = (3 * n_rows * kg_emb_dim * in_isize
                      + n_rows * relation_num * out_isize + weight_bytes)

    out = pl.pallas_call(
        _mlp_kernel,
        out_shape=jax.ShapeDtypeStruct((n_rows, relation_num), out_dtype),
        grid=grid,
        in_specs=[row_spec, row_spec, row_spec,
                  resident(w1c), resident(b1c),
                  resident(w2c), resident(b2c),
                  resident(w3c), resident(b3c),
                  resident(w4c), resident(b4c)],
        out_specs=pl.BlockSpec((tm, relation_num), lambda i: (i, 0)),
        compiler_params=pltpu.CompilerParams(
            dimension_semantics=("parallel",),
            vmem_limit_bytes=32 * 1024 * 1024),
        cost_estimate=pl.CostEstimate(
            flops=flops, transcendentals=0, bytes_accessed=bytes_accessed),
    )(es2, ed2, ctx2, *weights)

    return out.reshape(*lead_shape, relation_num)


def init_params(key, kg_emb_dim, d_inner, relation_num):
    """Deterministic synthetic params. Weights are (in, out); biases (1, out)."""
    dims = [
        (kg_emb_dim * 7, d_inner * 2),
        (d_inner * 2, d_inner // 2),
        (d_inner // 2, kg_emb_dim),
        (kg_emb_dim, relation_num),
    ]
    params = []
    for (din, dout) in dims:
        key, kw, kb = jax.random.split(key, 3)
        bound = 1.0 / jnp.sqrt(jnp.float32(din))
        w = jax.random.uniform(kw, (din, dout), jnp.float32, -bound, bound)
        b = jax.random.uniform(kb, (1, dout), jnp.float32, -bound, bound)
        params.append((w, b))
    return params


def reference_forward_f32(es, ed, ctx, params):
    """Plain-JAX f32 reference of the PyTorch module."""
    (w1, b1), (w2, b2), (w3, b3), (w4, b4) = params
    es = es.astype(jnp.float32)
    ed = ed.astype(jnp.float32)
    ctx = ctx.astype(jnp.float32)
    m = jnp.concatenate(
        [es, ed, ctx, es * ed, es * ctx, ed * ctx, es * ed * ctx], axis=-1)
    h = jax.nn.relu(m @ w1 + b1[0])
    h = jax.nn.relu(h @ w2 + b2[0])
    h = jax.nn.relu(h @ w3 + b3[0])
    return h @ w4 + b4[0]


def reference_forward_mxu(es, ed, ctx, params, mxu_dtype=jnp.bfloat16):
    """Reference mirroring the kernel's f32-VPU / bf16-MXU / f32-accum math."""
    (w1, b1), (w2, b2), (w3, b3), (w4, b4) = params

    def dot(a, w):
        return jnp.dot(a.astype(mxu_dtype), w.astype(mxu_dtype),
                       preferred_element_type=jnp.float32)

    es = es.astype(jnp.float32)
    ed = ed.astype(jnp.float32)
    ctx = ctx.astype(jnp.float32)
    eed = es * ed
    m = jnp.concatenate(
        [es, ed, ctx, eed, es * ctx, ed * ctx, eed * ctx], axis=-1)
    h = jax.nn.relu(dot(m, w1) + b1[0])
    h = jax.nn.relu(dot(h, w2) + b2[0])
    h = jax.nn.relu(dot(h, w3) + b3[0])
    return dot(h, w4) + b4[0]


if __name__ == "__main__":
    kg_emb_dim = 32
    d_inner = 64
    relation_num = 8

    key = jax.random.PRNGKey(0)
    k_es, k_ed, k_ctx, k_params = jax.random.split(key, 4)

    # 26 rows -> tm=16, grid=(2,), with a partial 10-row tail block: exercises
    # the masked-boundary path that replaced the old jnp.pad row padding.
    lead = (2, 13)
    es_rep = jax.random.normal(k_es, (*lead, kg_emb_dim), jnp.float32)
    ed_rep = jax.random.normal(k_ed, (*lead, kg_emb_dim), jnp.float32)
    context_rep = jax.random.normal(k_ctx, (*lead, kg_emb_dim), jnp.float32)

    params = init_params(k_params, kg_emb_dim, d_inner, relation_num)

    out = kg_context_infer_forward(es_rep, ed_rep, context_rep, params)
    out = jax.block_until_ready(out)
    assert out.shape == (*lead, relation_num), out.shape

    # Tight check against a reference that applies the same bf16 MXU casts.
    ref_mxu = reference_forward_mxu(es_rep, ed_rep, context_rep, params)
    assert jnp.allclose(out, ref_mxu, atol=1e-2, rtol=1e-2), (
        "mismatch vs bf16-MXU reference: max abs diff "
        f"{float(jnp.max(jnp.abs(out - ref_mxu)))}")

    # Loose check against the full-f32 PyTorch-equivalent reference.
    ref_f32 = reference_forward_f32(es_rep, ed_rep, context_rep, params)
    assert jnp.allclose(out, ref_f32, atol=5e-2, rtol=5e-2), (
        "mismatch vs f32 reference: max abs diff "
        f"{float(jnp.max(jnp.abs(out - ref_f32)))}")

    # bf16-input path (the bandwidth-optimal way to call the kernel).
    es_b = es_rep.astype(jnp.bfloat16)
    ed_b = ed_rep.astype(jnp.bfloat16)
    ctx_b = context_rep.astype(jnp.bfloat16)
    out_b = kg_context_infer_forward(es_b, ed_b, ctx_b, params)
    out_b = jax.block_until_ready(out_b)
    ref_b = reference_forward_mxu(es_b, ed_b, ctx_b, params)
    assert jnp.allclose(out_b, ref_b, atol=1e-2, rtol=1e-2), (
        "mismatch (bf16 inputs) vs bf16-MXU reference: max abs diff "
        f"{float(jnp.max(jnp.abs(out_b - ref_b)))}")

    print("KERNEL_OK")
</pallas_src>

<mosaic_0001>
module attributes {stable_mosaic.version = 11 : i64} {
  func.func @_mlp_kernel(%arg0: i32, %arg1: memref<16x32xf32, #tpu.memory_space<vmem>>, %arg2: memref<16x32xf32, #tpu.memory_space<vmem>>, %arg3: memref<16x32xf32, #tpu.memory_space<vmem>>, %arg4: memref<224x128xbf16, #tpu.memory_space<vmem>>, %arg5: memref<1x128xf32, #tpu.memory_space<vmem>>, %arg6: memref<128x32xbf16, #tpu.memory_space<vmem>>, %arg7: memref<1x32xf32, #tpu.memory_space<vmem>>, %arg8: memref<32x32xbf16, #tpu.memory_space<vmem>>, %arg9: memref<1x32xf32, #tpu.memory_space<vmem>>, %arg10: memref<32x8xbf16, #tpu.memory_space<vmem>>, %arg11: memref<1x8xf32, #tpu.memory_space<vmem>>, %arg12: memref<16x8xf32, #tpu.memory_space<vmem>>) attributes {dimension_semantics = [#tpu.dimension_semantics<parallel>], iteration_bounds = array<i64: 2>, scalar_prefetch = 0 : i64, scratch_operands = 0 : i64, tpu.core_type = #tpu.core_type<tc>, window_params = [{transform_indices = @transform_0, window_bounds = array<i64: 16, 32>}, {transform_indices = @transform_1, window_bounds = array<i64: 16, 32>}, {transform_indices = @transform_2, window_bounds = array<i64: 16, 32>}, {pipeline_mode = #tpu.pipeline_mode<synchronous>, transform_indices = @transform_3, window_bounds = array<i64: 224, 128>}, {pipeline_mode = #tpu.pipeline_mode<synchronous>, transform_indices = @transform_4, window_bounds = array<i64: 1, 128>}, {pipeline_mode = #tpu.pipeline_mode<synchronous>, transform_indices = @transform_5, window_bounds = array<i64: 128, 32>}, {pipeline_mode = #tpu.pipeline_mode<synchronous>, transform_indices = @transform_6, window_bounds = array<i64: 1, 32>}, {pipeline_mode = #tpu.pipeline_mode<synchronous>, transform_indices = @transform_7, window_bounds = array<i64: 32, 32>}, {pipeline_mode = #tpu.pipeline_mode<synchronous>, transform_indices = @transform_8, window_bounds = array<i64: 1, 32>}, {pipeline_mode = #tpu.pipeline_mode<synchronous>, transform_indices = @transform_9, window_bounds = array<i64: 32, 8>}, {pipeline_mode = #tpu.pipeline_mode<synchronous>, transform_indices = @transform_10, window_bounds = array<i64: 1, 8>}, {transform_indices = @transform_11, window_bounds = array<i64: 16, 8>}]} {
    %c0 = arith.constant 0 : index
    %c0_0 = arith.constant 0 : index
    %0 = vector.load %arg1[%c0, %c0_0] : memref<16x32xf32, #tpu.memory_space<vmem>>, vector<16x32xf32>
    %c0_1 = arith.constant 0 : index
    %c0_2 = arith.constant 0 : index
    %1 = vector.load %arg2[%c0_1, %c0_2] : memref<16x32xf32, #tpu.memory_space<vmem>>, vector<16x32xf32>
    %c0_3 = arith.constant 0 : index
    %c0_4 = arith.constant 0 : index
    %2 = vector.load %arg3[%c0_3, %c0_4] : memref<16x32xf32, #tpu.memory_space<vmem>>, vector<16x32xf32>
    %3 = arith.mulf %0, %1 : vector<16x32xf32>
    %4 = arith.mulf %0, %2 : vector<16x32xf32>
    %5 = arith.mulf %1, %2 : vector<16x32xf32>
    %6 = arith.mulf %3, %2 : vector<16x32xf32>
    %7 = tpu.concatenate %0, %1, %2, %3, %4, %5, %6 in 1 : vector<16x32xf32>, vector<16x32xf32>, vector<16x32xf32>, vector<16x32xf32>, vector<16x32xf32>, vector<16x32xf32>, vector<16x32xf32> -> vector<16x224xf32>
    %8 = arith.truncf %7 : vector<16x224xf32> to vector<16x224xbf16>
    %c0_5 = arith.constant 0 : index
    %c0_6 = arith.constant 0 : index
    %9 = vector.load %arg4[%c0_5, %c0_6] : memref<224x128xbf16, #tpu.memory_space<vmem>>, vector<224x128xbf16>
    %cst = arith.constant dense<0.000000e+00> : vector<16x128xf32>
    %10 = tpu.matmul %8, %9, %cst {dimension_numbers = #tpu.dot_dimension_numbers<[1], [0], [0], [1], [0, 0, 1, 1], [], []>} : vector<16x224xbf16>, vector<224x128xbf16>, vector<16x128xf32> -> vector<16x128xf32>
    %c0_7 = arith.constant 0 : index
    %c0_8 = arith.constant 0 : index
    %11 = vector.load %arg5[%c0_7, %c0_8] : memref<1x128xf32, #tpu.memory_space<vmem>>, vector<1x128xf32>
    %12 = vector.broadcast %11 : vector<1x128xf32> to vector<16x128xf32>
    %13 = arith.addf %10, %12 : vector<16x128xf32>
    %cst_9 = arith.constant 0.000000e+00 : f32
    %14 = vector.broadcast %cst_9 : f32 to vector<16x128xf32>
    %15 = arith.maximumf %13, %14 : vector<16x128xf32>
    %16 = arith.truncf %15 : vector<16x128xf32> to vector<16x128xbf16>
    %c0_10 = arith.constant 0 : index
    %c0_11 = arith.constant 0 : index
    %17 = vector.load %arg6[%c0_10, %c0_11] : memref<128x32xbf16, #tpu.memory_space<vmem>>, vector<128x32xbf16>
    %cst_12 = arith.constant dense<0.000000e+00> : vector<16x32xf32>
    %18 = tpu.matmul %16, %17, %cst_12 {dimension_numbers = #tpu.dot_dimension_numbers<[1], [0], [0], [1], [0, 0, 1, 1], [], []>} : vector<16x128xbf16>, vector<128x32xbf16>, vector<16x32xf32> -> vector<16x32xf32>
    %c0_13 = arith.constant 0 : index
    %c0_14 = arith.constant 0 : index
    %19 = vector.load %arg7[%c0_13, %c0_14] : memref<1x32xf32, #tpu.memory_space<vmem>>, vector<1x32xf32>
    %20 = vector.broadcast %19 : vector<1x32xf32> to vector<16x32xf32>
    %21 = arith.addf %18, %20 : vector<16x32xf32>
    %cst_15 = arith.constant 0.000000e+00 : f32
    %22 = vector.broadcast %cst_15 : f32 to vector<16x32xf32>
    %23 = arith.maximumf %21, %22 : vector<16x32xf32>
    %24 = arith.truncf %23 : vector<16x32xf32> to vector<16x32xbf16>
    %c0_16 = arith.constant 0 : index
    %c0_17 = arith.constant 0 : index
    %25 = vector.load %arg8[%c0_16, %c0_17] : memref<32x32xbf16, #tpu.memory_space<vmem>>, vector<32x32xbf16>
    %cst_18 = arith.constant dense<0.000000e+00> : vector<16x32xf32>
    %26 = tpu.matmul %24, %25, %cst_18 {dimension_numbers = #tpu.dot_dimension_numbers<[1], [0], [0], [1], [0, 0, 1, 1], [], []>} : vector<16x32xbf16>, vector<32x32xbf16>, vector<16x32xf32> -> vector<16x32xf32>
    %c0_19 = arith.constant 0 : index
    %c0_20 = arith.constant 0 : index
    %27 = vector.load %arg9[%c0_19, %c0_20] : memref<1x32xf32, #tpu.memory_space<vmem>>, vector<1x32xf32>
    %28 = vector.broadcast %27 : vector<1x32xf32> to vector<16x32xf32>
    %29 = arith.addf %26, %28 : vector<16x32xf32>
    %cst_21 = arith.constant 0.000000e+00 : f32
    %30 = vector.broadcast %cst_21 : f32 to vector<16x32xf32>
    %31 = arith.maximumf %29, %30 : vector<16x32xf32>
    %32 = arith.truncf %31 : vector<16x32xf32> to vector<16x32xbf16>
    %c0_22 = arith.constant 0 : index
    %c0_23 = arith.constant 0 : index
    %33 = vector.load %arg10[%c0_22, %c0_23] : memref<32x8xbf16, #tpu.memory_space<vmem>>, vector<32x8xbf16>
    %cst_24 = arith.constant dense<0.000000e+00> : vector<16x8xf32>
    %34 = tpu.matmul %32, %33, %cst_24 {dimension_numbers = #tpu.dot_dimension_numbers<[1], [0], [0], [1], [0, 0, 1, 1], [], []>} : vector<16x32xbf16>, vector<32x8xbf16>, vector<16x8xf32> -> vector<16x8xf32>
    %c0_25 = arith.constant 0 : index
    %c0_26 = arith.constant 0 : index
    %35 = vector.load %arg11[%c0_25, %c0_26] : memref<1x8xf32, #tpu.memory_space<vmem>>, vector<1x8xf32>
    %36 = vector.broadcast %35 : vector<1x8xf32> to vector<16x8xf32>
    %37 = arith.addf %34, %36 : vector<16x8xf32>
    %c0_27 = arith.constant 0 : index
    %c0_28 = arith.constant 0 : index
    %38 = vector.load %arg12[%c0_27, %c0_28] : memref<16x8xf32, #tpu.memory_space<vmem>>, vector<16x8xf32>
    tpu.vector_store %arg12[%c0_27, %c0_28], %37 {strides = array<i32>} : memref<16x8xf32, #tpu.memory_space<vmem>>, vector<16x8xf32>,
    return
  }
  func.func @transform_0(%arg0: i32) -> (i32, i32) {
    %c0_i32 = arith.constant 0 : i32
    %c0_i32_0 = arith.constant 0 : i32
    return %arg0, %c0_i32 : i32, i32
  }
  func.func @transform_1(%arg0: i32) -> (i32, i32) {
    %c0_i32 = arith.constant 0 : i32
    %c0_i32_0 = arith.constant 0 : i32
    return %arg0, %c0_i32 : i32, i32
  }
  func.func @transform_2(%arg0: i32) -> (i32, i32) {
    %c0_i32 = arith.constant 0 : i32
    %c0_i32_0 = arith.constant 0 : i32
    return %arg0, %c0_i32 : i32, i32
  }
  func.func @transform_3(%arg0: i32) -> (i32, i32) {
    %c0_i32 = arith.constant 0 : i32
    %c0_i32_0 = arith.constant 0 : i32
    %c0_i32_1 = arith.constant 0 : i32
    return %c0_i32, %c0_i32_0 : i32, i32
  }
  func.func @transform_4(%arg0: i32) -> (i32, i32) {
    %c0_i32 = arith.constant 0 : i32
    %c0_i32_0 = arith.constant 0 : i32
    %c0_i32_1 = arith.constant 0 : i32
    return %c0_i32, %c0_i32_0 : i32, i32
  }
  func.func @transform_5(%arg0: i32) -> (i32, i32) {
    %c0_i32 = arith.constant 0 : i32
    %c0_i32_0 = arith.constant 0 : i32
    %c0_i32_1 = arith.constant 0 : i32
    return %c0_i32, %c0_i32_0 : i32, i32
  }
  func.func @transform_6(%arg0: i32) -> (i32, i32) {
    %c0_i32 = arith.constant 0 : i32
    %c0_i32_0 = arith.constant 0 : i32
    %c0_i32_1 = arith.constant 0 : i32
    return %c0_i32, %c0_i32_0 : i32, i32
  }
  func.func @transform_7(%arg0: i32) -> (i32, i32) {
    %c0_i32 = arith.constant 0 : i32
    %c0_i32_0 = arith.constant 0 : i32
    %c0_i32_1 = arith.constant 0 : i32
    return %c0_i32, %c0_i32_0 : i32, i32
  }
  func.func @transform_8(%arg0: i32) -> (i32, i32) {
    %c0_i32 = arith.constant 0 : i32
    %c0_i32_0 = arith.constant 0 : i32
    %c0_i32_1 = arith.constant 0 : i32
    return %c0_i32, %c0_i32_0 : i32, i32
  }
  func.func @transform_9(%arg0: i32) -> (i32, i32) {
    %c0_i32 = arith.constant 0 : i32
    %c0_i32_0 = arith.constant 0 : i32
    %c0_i32_1 = arith.constant 0 : i32
    return %c0_i32, %c0_i32_0 : i32, i32
  }
  func.func @transform_10(%arg0: i32) -> (i32, i32) {
    %c0_i32 = arith.constant 0 : i32
    %c0_i32_0 = arith.constant 0 : i32
    %c0_i32_1 = arith.constant 0 : i32
    return %c0_i32, %c0_i32_0 : i32, i32
  }
  func.func @transform_11(%arg0: i32) -> (i32, i32) {
    %c0_i32 = arith.constant 0 : i32
    %c0_i32_0 = arith.constant 0 : i32
    return %arg0, %c0_i32 : i32, i32
  }
}

</mosaic_0001>

<bundles_post_ra>
// kernel: tpu_custom_call.1
= control target key start
LH: loop header
LB: loop body
LE: loop exit
PB: predicated region body
PF: predicated region fallthrough
CT: control target
= control target key end

     0   :  { %16 = vsyncpa [#allocation3], 0  ;;  %s1604_s0 = inlined_call_operand.vmem [shape: f32[26,32], index: 0, kind: input, shape index: {}]   ;;  %s1605_s1 = inlined_call_operand.vmem [shape: f32[26,32], index: 1, kind: input, shape index: {}]   ;;  %s1606_s2 = inlined_call_operand.vmem [shape: f32[26,32], index: 2, kind: input, shape index: {}]   ;;  %s1607_s3 = inlined_call_operand.hbm [shape: bf16[224,128], index: 3, kind: input, shape index: {}]   ;;  %s1608_s4 = inlined_call_operand.vmem [shape: f32[1,128], index: 4, kind: input, shape index: {}]   ;;  %s1609_s5 = inlined_call_operand.vmem [shape: bf16[128,32], index: 5, kind: input, shape index: {}]   ;;  %s1610_s6 = inlined_call_operand.vmem [shape: f32[1,32], index: 6, kind: input, shape index: {}]   ;;  %s1611_s7 = inlined_call_operand.hbm [shape: bf16[32,32], index: 7, kind: input, shape index: {}]   ;;  %s1612_s8 = inlined_call_operand.vmem [shape: f32[1,32], index: 8, kind: input, shape index: {}]   ;;  %s1613_s9 = inlined_call_operand.vmem [shape: bf16[32,8], index: 9, kind: input, shape index: {}]   ;;  %s1614_s10 = inlined_call_operand.vmem [shape: f32[1,8], index: 10, kind: input, shape index: {}]   ;;  %s1615_s11 = inlined_call_operand.vmem [shape: f32[26,8], index: 11, kind: output, shape index: {}]  }
   0x1   :  { %17 = vsyncpa [#allocation5], 0  ;;  %s1390_s17 = smov 0  }
   0x2 LB: > { %s1057_s18 = sadd.s32 4294967295, %s1318_s17   ;;  %p1059_p0 = scmp.ge.s32.totalorder %s1318_s17, 1  ;;  %s1318_s17 = sphi %s1390_s17, %s23_s17  }
   0x3   : > { %p300_p1 = scmp.lt.s32.totalorder %s1318_s17, 3  ;;  %s1320_s19 = smov [#allocation2]  }
   0x4   : > { %s312_s20 = sshll.u32 %s1320_s19, 4  ;;  %p1404_p3 = scmp.eq.s32.totalorder %s1057_s18, 0  ;;  %s313_s20 = int_to_ptr.vmem [resolvable:$true] %s312_s20 }
   0x5   : > { %p1398_p2 = pnand %p1059_p0, %p300_p1  ;;  %s1321_s23 = smov [#allocation4]  }
   0x6   : > { %s1620_s22 = scalar_select %p1404_p3, 1, 0 }
   0x7   : > { %s1619_s21 = scalar_select %p1398_p2, 1, 0 }
   0x8   : > { %p1168_p4 = pneg %p1398_p2  ;;  %s334_s24 = sshll.u32 %s1321_s23, 4  ;;  %s1416_s24 = int_to_ptr.vmem [resolvable:$true] %s334_s24 }
   0x9   : > { %s1248_s28 = scalar_lea.hbm %s1607_s3, 1792 }
   0xa   : > { %p1412_p5 = pnand %p1404_p3, %p1168_p4  ;;  %p1249_p6 = scmp.ne.s32.totalorder %s1607_s3, %s1248_s28 }
   0xb   : > { %p1255_p10 = scmp.lt.u32.totalorder %s1248_s28, %s1607_s3 }
   0xc   : > { %p1250_p7 = pneg %p1412_p5 }
   0xe   : > { %p1251_p8 = pnand %p1250_p7, %p1249_p6 }
  0x10   : > { %p1252_p9 = pneg %p1251_p8 }
  0x12   : > { %p1257_p11 = pnand %p1255_p10, %p1252_p9 }
  0x14   : > { %1260 = shalt.err (!%p1257_p11)
}
  0x15   : > { %s1261_s14 = scalar_lea.vmem %s313_s20, 1792  ;;  %p1269_p1 = scmp.lt.s32.totalorder %s313_s20, %s313_s20 }
  0x16   : > { %p1262_p12 = scmp.ne.s32.totalorder %s313_s20, %s1261_s14  ;;  %p1270_p4 = scmp.lt.s32.totalorder %s1261_s14, %s1261_s14 }
  0x18   : > { %p1264_p13 = pnand %p1262_p12, %p1250_p7  ;;  %p1271_p3 = por %p1270_p4, %p1269_p1 }
  0x1a   : > { %p1265_p0 = pneg %p1264_p13 }
  0x1c   : > { %p1272_p2 = pnand %p1271_p3, %p1265_p0 }
  0x1e   : > { %1275 = shalt.err (!%p1272_p2)
}
  0x1f   : > { %s1322_s15 = smov 64   ;;  %s1323_s16 = smov 4  }
  0x20   : > { %1171 = dma.hbm_to_vmem [thread:$0]  (!%p1412_p5), %s1607_s3, 1792, %s313_s20, [#allocation3], %s1322_s15, %s1322_s15, %s1323_s16  }
  0x21   : > { %s1276_s28 = scalar_lea.hbm %s1611_s7, 256 }
  0x22   : > { %p1277_p6 = scmp.ne.s32.totalorder %s1611_s7, %s1276_s28  ;;  %p1283_p8 = scmp.lt.u32.totalorder %s1276_s28, %s1611_s7 }
  0x24   : > { %p1279_p2 = pnand %p1277_p6, %p1250_p7 }
  0x26   : > { %p1280_p3 = pneg %p1279_p2 }
  0x28   : > { %p1285_p9 = pnand %p1283_p8, %p1280_p3 }
  0x2a   : > { %1288 = shalt.err (!%p1285_p9)
}
  0x2b   : > { %s1289_s20 = scalar_lea.vmem %s1416_s24, 256  ;;  %p1297_p13 = scmp.lt.s32.totalorder %s1416_s24, %s1416_s24 }
  0x2c   : > { %p1290_p10 = scmp.ne.s32.totalorder %s1416_s24, %s1289_s20  ;;  %p1298_p0 = scmp.lt.s32.totalorder %s1289_s20, %s1289_s20 }
  0x2e   : > { %p1292_p11 = pnand %p1290_p10, %p1250_p7  ;;  %p1299_p1 = por %p1298_p0, %p1297_p13 }
  0x30   : > { %p1293_p12 = pneg %p1292_p11 }
  0x32   : > { %p1300_p4 = pnand %p1299_p1, %p1293_p12 }
  0x34   : > { %1303 = shalt.err (!%p1300_p4)
}
  0x35   : > { %1174 = dma.hbm_to_vmem [thread:$0]  (!%p1412_p5), %s1611_s7, 256, %s1416_s24, [#allocation5], %s1322_s15, %s1322_s15, %s1323_s16  }
  0x36   : > { %p1622_p6 = scmp.ne.s32.totalorder %s1619_s21, 0 }
  0x37   : > { %p1623_p2 = scmp.ne.s32.totalorder (!%p1622_p6), %s1620_s22, 0 }
  0x38   : > { %386 = sbr.rel (%p1622_p6) target bundleno = 1080 (0x438), region = 64 }
  0x3f   : > { %1309 = dma.done.wait (%p1623_p2), [#allocation3], 1792  }
  0x40   : > { %1311 = vsyncadd (%p1623_p2), [#allocation3], 4294965504 }
  0x41   : > { %1313 = dma.done.wait (%p1623_p2), [#allocation5], 256  }
  0x42   : > { %1315 = vsyncadd (%p1623_p2), [#allocation5], 4294967040  ;;  %s1066_s25 = sshll.u32 %s1057_s18, 1  ;;  %v1324_v0 = vmov 0   ;;  %v1222_v13 = vld [vmem:[#allocation2] sm:$0xff]   ;;  %s1325_s29 = smov 32  }
  0x43   : > { %p441_p7 = scmp.lt.s32.totalorder %s1066_s25, 3  ;;  %656 = vmatprep.subr.bf16.mxu0 %v1324_v0  ;;  %s1326_s30 = smov 64   ;;  %v1223_v17 = vld [vmem:[#allocation2 + $0x8] sm:$0xff]   ;;  %v1327_v18 = vmov 0.0   ;;  %v1224_v21 = vld [vmem:[#allocation2 + $0x10] sm:$0xff]   ;;  %v1225_v22 = vld [vmem:[#allocation2 + $0x18] sm:$0xff]  }
  0x44   : > { %657 = vmatpush1.bf16.msra.mxu0 %v1222_v13  ;;  %1124 = vmatprep.subr.bf16.mxu1 %v1327_v18  ;;  %s1328_s12 = smov 96   ;;  %v1226_v23 = vld [vmem:[#allocation2 + $0x20] sm:$0xff]   ;;  %v1237_v25 = vld [vmem:[%s1609_s5 + $0x8] sm:$0xff]   ;;  %v1228_v27 = vld [vmem:[#allocation2 + $0x30] sm:$0xff]   ;;  %vm519_vm0 = vcmask 261120   ;;  %vm522_vm1 = vcmask 523264  }
  0x45   : > { %s1625_s25 = smov (!%p441_p7, %s1066_s25), 3  ;;  %658 = vmatprep.subr.bf16.mxu0 %v1324_v0  ;;  %v1236_v24 = vld [vmem:[%s1609_s5] sm:$0xff]   ;;  %v1227_v26 = vld [vmem:[#allocation2 + $0x28] sm:$0xff]   ;;  %v1238_v28 = vld [vmem:[%s1609_s5 + $0x10] sm:$0xff]   ;;  %vm525_vm2 = vcmask 785408   ;;  %vm1329_vm3 = vmmov 0  }
  0x46   : > { %s1478_s21 = sshll.u32 %s1625_s25, 3  ;;  %1125 = vmatpush3.bf16.msra.mxu1 %v1236_v24  ;;  %v1239_v29 = vld [vmem:[%s1609_s5 + $0x18] sm:$0xff]   ;;  %v1240_v31 = vld [vmem:[%s1609_s5 + $0x20] sm:$0xff]   ;;  %v1241_v33 = vld [vmem:[%s1609_s5 + $0x28] sm:$0xff]   ;;  %1140 = vmatprep.mubr.msk.bf16.mxu1 %vm1329_vm3, %v1327_v18  ;;  %vm952_vm4 = vcmask 64512  }
  0x47   : > { %s444_s16 = scalar_lea.vmem %s1604_s0, %s1478_s21  ;;  %s450_s26 = scalar_lea.vmem %s1605_s1, %s1478_s21  ;;  %1126 = vmatprep.subr.bf16.mxu1 %v1327_v18  ;;  %v1229_v30 = vld [vmem:[#allocation2 + $0x38] sm:$0xff]   ;;  %v1230_v32 = vld [vmem:[#allocation2 + $0x40] sm:$0xff]   ;;  %v1231_v34 = vld [vmem:[#allocation2 + $0x48] sm:$0xff]  }
  0x48   : > { %v467_v1 = vld [vmem:[%s450_s26] sm:$0xff]  ;;  %v468_v2 = vld [vmem:[%s450_s26 + $0x8] sm:$0xff]  ;;  %s456_s28 = scalar_lea.vmem %s1606_s2, %s1478_s21  ;;  %659 = vmatpush1.bf16.msra.mxu0 %v1223_v17  ;;  %v1232_v35 = vld [vmem:[#allocation2 + $0x50] sm:$0xff]  }
  0x49   : > { %v1488_v3 = vld [vmem:[%s444_s16] sm:$0xff]  ;;  %v1197_v4 = vpack.i.bf16 %v468_v2, %v467_v1  ;;  %v1494_v5 = vld [vmem:[%s444_s16 + $0x8] sm:$0xff]  ;;  %660 = vmatprep.subr.bf16.mxu0 %v1324_v0  ;;  %v1233_v36 = vld [vmem:[#allocation2 + $0x58] sm:$0xff]  }
  0x4a   : > { %v471_v6 = vmul.f32 %v467_v1, %v1488_v3  ;;  %v1497_v7 = vld [vmem:[%s456_s28] sm:$0xff]  ;;  %v1499_v8 = vld [vmem:[%s456_s28 + $0x8] sm:$0xff]  ;;  %v472_v9 = vmul.f32 %v468_v2, %v1494_v5  ;;  %1127 = vmatpush3.bf16.msra.mxu1 %v1237_v25  ;;  %v1245_v17 = vld [vmem:[#allocation4 + $0x8] sm:$0xff]   ;;  %s462_s28 = scalar_lea.vmem %s1615_s11, %s1478_s21 }
  0x4b   : > { %v1202_v10 = vpack.i.bf16 %v1499_v8, %v1497_v7  ;;  %v475_v11 = vmul.f32 %v1497_v7, %v467_v1  ;;  %v476_v12 = vmul.f32 %v1499_v8, %v468_v2  ;;  %1198 = vrot.lane.b32.xlu0 %v1197_v4, %s1325_s29  ;;  %1128 = vmatprep.subr.bf16.mxu1 %v1327_v18  ;;  %v1234_v37 = vld [vmem:[#allocation2 + $0x60] sm:$0xff]   ;;  %v1235_v38 = vld [vmem:[#allocation2 + $0x68] sm:$0xff]   ;;  %v1242_v4 = vld [vmem:[%s1609_s5 + $0x30] sm:$0xff]  }
  0x4c   : > { %v477_v14 = vmul.f32 %v471_v6, %v1497_v7  ;;  %v478_v16 = vmul.f32 %v472_v9, %v1499_v8  ;;  %v1217_v20 = vpack.i.bf16 %v472_v9, %v471_v6  ;;  %661 = vmatpush1.bf16.msra.mxu0 %v1224_v21  ;;  %v473_v43 = vmul.f32 %v1497_v7, %v1488_v3  ;;  %v1074_v6 = vld [vmem:[%s1608_s4] ss:$0 sm:$0xff] }
  0x4d   : > { %1203 = vrot.lane.b32.xlu1 %v1202_v10, %s1326_s30  ;;  %v1207_v15 = vpack.i.bf16 %v476_v12, %v475_v11  ;;  %662 = vmatprep.subr.bf16.mxu0 %v1324_v0  ;;  %v474_v44 = vmul.f32 %v1499_v8, %v1494_v5 }
  0x4e   : > { %v1212_v19 = vpack.i.bf16 %v478_v16, %v477_v14  ;;  %1129 = vmatpush3.bf16.msra.mxu1 %v1238_v28  ;;  %v1244_v16 = vld [vmem:[#allocation4] sm:$0xff]  }
  0x4f   : > { %1208 = vrot.lane.b32.xlu0 %v1207_v15, %s1325_s29  ;;  %1130 = vmatprep.subr.bf16.mxu1 %v1327_v18 }
  0x50   : > { %663 = vmatpush1.bf16.msra.mxu0 %v1225_v22 }
  0x51   : > { %1213 = vrot.lane.b32.xlu1 %v1212_v19, %s1326_s30  ;;  %664 = vmatprep.subr.bf16.mxu0 %v1324_v0  ;;  %v1090_v19 = vld [vmem:[%s1610_s6] ss:$0 sm:$0xff] }
  0x52   : > { %1131 = vmatpush3.bf16.msra.mxu1 %v1239_v29  ;;  %v1246_v29 = vld [vmem:[%s1613_s9] sm:$0xff]  }
  0x53   : > { %1218 = vrot.lane.b32.xlu0 %v1217_v20, %s1328_s12  ;;  %1132 = vmatprep.subr.bf16.mxu1 %v1327_v18 }
  0x54   : > { %665 = vmatpush1.bf16.msra.mxu0 %v1226_v23 }
  0x55   : > { %666 = vmatprep.subr.bf16.mxu0 %v1324_v0 }
  0x56   : > { %1133 = vmatpush3.bf16.msra.mxu1 %v1240_v31  ;;  %v1099_v31 = vld [vmem:[%s1612_s8] ss:$0 sm:$0xff] }
  0x57   : > { %1134 = vmatprep.subr.bf16.mxu1 %v1327_v18 }
  0x58   : > { %667 = vmatpush1.bf16.msra.mxu0 %v1227_v26 }
  0x59   : > { %668 = vmatprep.subr.bf16.mxu0 %v1324_v0 }
  0x5a   : > { %1135 = vmatpush3.bf16.msra.mxu1 %v1241_v33 }
  0x5b   : > { %1136 = vmatprep.subr.bf16.mxu1 %v1327_v18 }
  0x5c   : > { %669 = vmatpush1.bf16.msra.mxu0 %v1228_v27 }
  0x5d   : > { %670 = vmatprep.subr.bf16.mxu0 %v1324_v0 }
  0x5e   : > { %1137 = vmatpush3.bf16.msra.mxu1 %v1242_v4 }
  0x5f   : > { %1138 = vmatprep.subr.bf16.mxu1 %v1327_v18 }
  0x60   : > { %671 = vmatpush1.bf16.msra.mxu0 %v1229_v30  ;;  %v1247_v30 = vld [vmem:[%s1613_s9 + $0x8] sm:$0xff]  }
  0x61   : > { %672 = vmatprep.subr.bf16.mxu0 %v1324_v0 }
  0x64   : > { %673 = vmatpush1.bf16.msra.mxu0 %v1230_v32 }
  0x65   : > { %674 = vmatprep.subr.bf16.mxu0 %v1324_v0 }
  0x68   : > { %675 = vmatpush1.bf16.msra.mxu0 %v1231_v34 }
  0x69   : > { %676 = vmatprep.subr.bf16.mxu0 %v1324_v0 }
  0x6c   : > { %677 = vmatpush1.bf16.msra.mxu0 %v1232_v35 }
  0x6d   : > { %678 = vmatprep.subr.bf16.mxu0 %v1324_v0 }
  0x70   : > { %679 = vmatpush1.bf16.msra.mxu0 %v1233_v36 }
  0x71   : > { %680 = vmatprep.subr.bf16.mxu0 %v1324_v0 }
  0x74   : > { %681 = vmatpush1.bf16.msra.mxu0 %v1234_v37 }
  0x75   : > { %682 = vmatprep.subr.bf16.mxu0 %v1324_v0 }
  0x78   : > { %683 = vmatpush1.bf16.msra.mxu0 %v1235_v38 }
  0xbd   : > { %v1199_v39 = vpop.permute.xlu0 %1198 }
  0xbe   : > { %v1201_v41 = vunpack.i.h.bf16 %v1199_v39  ;;  %v1200_v42 = vunpack.i.l.bf16 %v1199_v39 }
  0xbf   : > { %v1204_v40 = vpop.permute.xlu1 %1203 }
  0xc0   : > { %v1206_v49 = vunpack.i.h.bf16 %v1204_v40  ;;  %v1205_v50 = vunpack.i.l.bf16 %v1204_v40  ;;  %v520_v53 = vsel %vm519_vm0, %v1488_v3, %v1200_v42  ;;  %v521_v54 = vsel %vm519_vm0, %v1494_v5, %v1201_v41  ;;  %v1243_v5 = vld [vmem:[%s1609_s5 + $0x38] sm:$0xff]  }
  0xc1   : > { %v1209_v45 = vpop.permute.xlu0 %1208  ;;  %1139 = vmatpush3.bf16.msra.mxu1 %v1243_v5 }
  0xc2   : > { %v1211_v46 = vunpack.i.h.bf16 %v1209_v45  ;;  %v1210_v47 = vunpack.i.l.bf16 %v1209_v45  ;;  %v523_v63 = vsel %vm522_vm1, %v520_v53, %v1205_v50  ;;  %v524_v0 = vsel %vm522_vm1, %v521_v54, %v1206_v49  ;;  %1144 = vmatprep.subr.bf16.mxu1 %v1327_v18 }
  0xc3   : > { %v1214_v48 = vpop.permute.xlu1 %1213 }
  0xc4   : > { %v1216_v51 = vunpack.i.h.bf16 %v1214_v48  ;;  %v1215_v52 = vunpack.i.l.bf16 %v1214_v48  ;;  %v528_v55 = vsel %vm519_vm0, %v473_v43, %v1210_v47  ;;  %v529_v56 = vsel %vm519_vm0, %v474_v44, %v1211_v46 }
  0xc5   : > { %v1219_v57 = vpop.permute.xlu0 %1218 }
  0xc6   : > { %v530_v58 = vsel %vm522_vm1, %v528_v55, %v1215_v52  ;;  %v531_v59 = vsel %vm522_vm1, %v529_v56, %v1216_v51  ;;  %v1221_v60 = vunpack.i.h.bf16 %v1219_v57  ;;  %v1220_v61 = vunpack.i.l.bf16 %v1219_v57 }
  0xc7   : > { %v533_v62 = vpack.c.bf16 %v531_v59, %v530_v58 }
  0xc8   : > { %v526_v1 = vsel %vm525_vm2, %v523_v63, %v1220_v61  ;;  %v527_v2 = vsel %vm525_vm2, %v524_v0, %v1221_v60 }
  0xc9   : > { %1089 = vmatprep.mubr.msk.bf16.mxu0 %vm525_vm2, %v533_v62  ;;  %v532_v3 = vpack.c.bf16 %v527_v2, %v526_v1 }
  0xcb   : > { %689 = vmatmul.mubr.bf16.vlgmr.msra.gmra.mrb[0].mxu0 %v532_v3 }
 0x19e   : > { %v690_v7 = vpop.f32.mrb[0].mxu0 }
 0x19f   : > { %v691_v8 = vadd.f32 %v1074_v6, %v690_v7  ;;  %v692_v9 = vpop.f32.mrb[1].mxu0 }
 0x1a0   : > { %v693_v10 = vpop.f32.mrb[2].mxu0 }
 0x1a1   : > { %v694_v11 = vadd.f32 %v1074_v6, %v693_v10  ;;  %v695_v12 = vpop.f32.mrb[3].mxu0  ;;  %v697_v13 = vmax.f32 %v691_v8, 0.0 }
 0x1a3   : > { %v698_v14 = vmax.f32 %v694_v11, 0.0 }
 0x1a5   : > { %v699_v15 = vpack.c.bf16 %v698_v14, %v697_v13 }
 0x1a7   : > { %1141 = vmatmul.mubr.bf16.vlgmr.msra.gmra.mrb[0].mxu1 %v699_v15 }
 0x1a8   : > { %1148 = vmatprep.mubr.msk.bf16.mxu1 %vm1329_vm3, %v1327_v18  ;;  %1145 = vmatpush3.bf16.msra.mxu1 %v1244_v16 }
 0x1a9   : > { %1146 = vmatprep.subr.bf16.mxu1 %v1327_v18 }
 0x1ac   : > { %1147 = vmatpush3.bf16.msra.mxu1 %v1245_v17 }
 0x1ad   : > { %1152 = vmatprep.subr.bf16.mxu1 %v1327_v18 }
 0x27a   : > { %v805_v20 = vpop.f32.mrb[0].mxu1 }
 0x27b   : > { %v806_v21 = vadd.f32 %v1090_v19, %v805_v20  ;;  %v1142_v22 = vpop.f32.mrb[1].mxu1 }
 0x27c   : > { %v808_v23 = vpop.f32.mrb[2].mxu1 }
 0x27d   : > { %v809_v24 = vadd.f32 %v1090_v19, %v808_v23  ;;  %v1143_v25 = vpop.f32.mrb[3].mxu1  ;;  %v812_v26 = vmax.f32 %v806_v21, 0.0 }
 0x27f   : > { %v813_v27 = vmax.f32 %v809_v24, 0.0 }
 0x281   : > { %v814_v28 = vpack.c.bf16 %v813_v27, %v812_v26 }
 0x283   : > { %1149 = vmatmul.mubr.msk.bf16.vlgmr.msra.gmra.mrb[4].mxu1 %vm519_vm0, %v814_v28 }
 0x284   : > { %1156 = vmatprep.mubr.msk.bf16.mxu1 %vm1329_vm3, %v1327_v18  ;;  %1153 = vmatpush3.bf16.msra.mxu1 %v1246_v29 }
 0x285   : > { %1154 = vmatprep.subr.bf16.mxu1 %v1327_v18  ;;  %v1103_v18 = vld [vmem:[%s1614_s10] ss:$0 sm:$0xff] }
 0x288   : > { %1155 = vmatpush3.bf16.msra.mxu1 %v1247_v30 }
 0x356   : > { %v875_v32 = vpop.f32.mrb[4].mxu1 }
 0x357   : > { %v876_v33 = vadd.f32 %v1099_v31, %v875_v32  ;;  %v1150_v34 = vpop.f32.mrb[5].mxu1 }
 0x358   : > { %v878_v35 = vpop.f32.mrb[6].mxu1 }
 0x359   : > { %v879_v36 = vadd.f32 %v1099_v31, %v878_v35  ;;  %v1151_v37 = vpop.f32.mrb[7].mxu1  ;;  %v882_v38 = vmax.f32 %v876_v33, 0.0 }
 0x35b   : > { %v883_v39 = vmax.f32 %v879_v36, 0.0 }
 0x35d   : > { %v884_v40 = vpack.c.bf16 %v883_v39, %v882_v38 }
 0x35f   : > { %1157 = vmatmul.mubr.msk.bf16.vlgmr.msra.gmra.mrb[8].mxu1 %vm519_vm0, %v884_v40 }
 0x432   : > { %v945_v41 = vpop.f32.mrb[8].mxu1 }
 0x433   : > { %v946_v42 = vadd.f32 %v1103_v18, %v945_v41  ;;  %v1158_v43 = vpop.f32.mrb[9].mxu1 }
 0x434   : > { %v948_v44 = vpop.f32.mrb[10].mxu1 }
 0x435   : > { %953 = vst.msk [vmem:[%s462_s28] sm:$0xff] %vm952_vm4, %v946_v42  ;;  %v949_v45 = vadd.f32 %v1103_v18, %v948_v44  ;;  %v1159_v46 = vpop.f32.mrb[11].mxu1 }
 0x437   : > { %954 = vst.msk [vmem:[%s462_s28 + $0x8] sm:$0xff] %vm952_vm4, %v949_v45 }
 0x438 PF: > { %s23_s17 = sadd.s32 1, %s1318_s17  }
 0x439   : > { %p20_p5 = scmp.ge.s32.totalorder %s23_s17, 4  }
 0x43b   :  { %22 = sbr.rel (!%p20_p5) target bundleno = 2 (0x2), region = 109 }
 0x442   :  { %977 = vsyncpa [#allocation3], 1 }
 0x443   :  { %979 = vsyncpa [#allocation3 + $0x1], 1 }
 0x444   :  { %980 = vsyncpa [#allocation5], 1 }

</bundles_post_ra>
